<compile_context>
chip_gen: v7x
topology: tpu7x:2x2x1
jax: 0.10.0
libtpu: 0.0.40
codegen_flags: <defaults>
</compile_context>

<pallas_src>
import jax
import jax.numpy as jnp
from jax.experimental import pallas as pl
from jax.experimental.pallas import tpu as pltpu


def _make_kernel(batch, tile_rows, inv_batch, mask_rows):
    """Kernel closure. `inv_batch` = 1/B for the per-head CE mean; `mask_rows`
    is a trace-time flag enabling masking of the padded trailing row tile."""

    def ce_tile_sum(logits_raw, labels, r):
        # Row max + label extraction in the native dtype (bf16 stays bf16 on
        # v6e/v7x; Mosaic upcasts on v5e); only exp/sum accumulation in f32.
        m = jnp.max(logits_raw, axis=-1, keepdims=True)               # (TR,1)
        col = jax.lax.broadcasted_iota(jnp.int32, logits_raw.shape, 1)
        zero = jnp.array(0, dtype=logits_raw.dtype)
        picked = jnp.where(col == labels, logits_raw, zero)
        label_logit = jnp.sum(picked, axis=-1,
                              keepdims=True).astype(jnp.float32)      # (TR,1)
        shifted = (logits_raw - m).astype(jnp.float32)
        lse = jnp.log(jnp.sum(jnp.exp(shifted), axis=-1, keepdims=True))
        nll = m.astype(jnp.float32) + lse - label_logit               # (TR,1)
        if mask_rows:
            row = (jax.lax.broadcasted_iota(jnp.int32, nll.shape, 0)
                   + r * tile_rows)
            nll = jnp.where(row < batch, nll, 0.0)
        return jnp.sum(nll)

    def kernel(labels_ref, main_ref, cls_ref, thr_ref, scal_ref,
               out_ref, acc_ref):
        r = pl.program_id(0)               # row-tile index (parallel axis)
        h = pl.program_id(1)               # head: 0 = main, 1..K = classifiers
        nh = pl.num_programs(1)

        # --- per-head CE: only the consumed operand is read / upcast ---------
        @pl.when(h == 0)
        def _head_main():
            acc_ref[0] = ce_tile_sum(main_ref[...], labels_ref[...], r)

        @pl.when(h != 0)
        def _head_aux():
            acc_ref[0] = acc_ref[0] + ce_tile_sum(cls_ref[...],
                                                  labels_ref[...], r)

        # --- finalize this row tile: lane-dense partial-sum write ------------
        @pl.when(h == nh - 1)
        def _finalize():
            out_ref[...] = jnp.full(out_ref.shape, acc_ref[0] * inv_batch,
                                    dtype=jnp.float32)

        # --- pruning regularizer: computed once, folded into row tile 0 ------
        @pl.when((h == nh - 1) & (r == 0))
        def _add_pruning():
            t = jax.nn.sigmoid(thr_ref[...].astype(jnp.float32))      # (4, 12)
            attn = jnp.maximum(t[0:1, :], 1.0 / 12.0)
            o_m = jnp.maximum(t[1:2, :], 1.0 / 768.0)
            fc1 = jnp.maximum(t[2:3, :], 1.0 / 3072.0)
            fc2 = jnp.maximum(t[3:4, :], 1.0 / 768.0)
            remain = attn * 3.0 + attn * o_m + fc1 * 4.0 + fc1 * fc2 * 4.0
            expected_sparsity = jnp.sum(remain) / 144.0   # param_remain / 144
            lam1 = scal_ref[0]
            lam2 = scal_ref[1]
            target = scal_ref[2]
            diff = expected_sparsity - target
            lag = jnp.where(diff <= 0.0, jnp.float32(0.0),
                            lam1 * diff + lam2 * diff * diff)
            out_ref[...] = out_ref[...] + lag

    return kernel


def _pick_tile_rows(batch, n_classes, itemsize, budget_bytes=8 << 20):
    """Largest row tile (multiple of 8, or the full batch) whose logits tile
    stays under `budget_bytes` of VMEM, counting lane padding to 128.
    The tile does NOT need to divide the batch: the trailing tile is masked."""
    lane_c = ((n_classes + 127) // 128) * 128
    bytes_per_row = lane_c * itemsize
    max_rows = max(8, (budget_bytes // bytes_per_row) // 8 * 8)
    if batch <= max_rows:
        return batch            # single full-dim block — always a legal block
    return max_rows             # multiple of 8; trailing partial tile masked


def loss_with_classifier_and_pruning(outputs, outputs_classifier, labels,
                                     thresholds, lambda_1, lambda_2,
                                     R_threshold=0.5, max_tile_rows=None):
    """
    outputs:             [B, C] logits of the main head (any float dtype).
    outputs_classifier:  [K, B, C] logits of the K auxiliary classifier heads.
    labels:              [B] int class ids (assumed in [0, C)).
    thresholds:          [4, 12] raw (pre-sigmoid) threshold parameters.
    """
    B, C = outputs.shape
    K, Bc, Cc = outputs_classifier.shape
    assert (Bc, Cc) == (B, C)
    assert K >= 1, "expects at least one auxiliary classifier head"
    assert labels.shape == (B,)

    itemsize = max(jnp.dtype(outputs.dtype).itemsize,
                   jnp.dtype(outputs_classifier.dtype).itemsize)
    tr = _pick_tile_rows(B, C, itemsize)
    if max_tile_rows is not None:
        cap = max(8, (int(max_tile_rows) // 8) * 8)
        if cap < tr:
            tr = cap
    if tr >= B:
        tr = B
    n_row_tiles = pl.cdiv(B, tr)
    mask_rows = (B % tr) != 0

    labels2d = labels.reshape(B, 1).astype(jnp.int32)

    # R_threshold >= 1 disables the pruning term.  Exact, because
    # expected_sparsity = param_remain/144 is bounded by construction, so a
    # huge target guarantees diff <= 0  =>  lag == 0.
    target = float(R_threshold) if R_threshold < 1 else 1e9
    scal = jnp.array([lambda_1, lambda_2, target], dtype=jnp.float32)

    kernel = _make_kernel(B, tr, 1.0 / float(B), mask_rows)

    partials = pl.pallas_call(
        kernel,
        out_shape=jax.ShapeDtypeStruct((n_row_tiles, 8, 128), jnp.float32),
        grid_spec=pltpu.PrefetchScalarGridSpec(
            num_scalar_prefetch=0,
            # Row tiles outer ("parallel": shards across TensorCores on v7x),
            # heads inner so labels / the main tile are DMA'd once per row
            # tile and the h==0 classifier prefetch is reused at h==1.
            grid=(n_row_tiles, K + 1),
            in_specs=[
                pl.BlockSpec((tr, 1), lambda r, h: (r, 0)),           # labels
                pl.BlockSpec((tr, C), lambda r, h: (r, 0)),           # main head
                pl.BlockSpec((pl.Squeezed(), tr, C),                  # aux heads
                             lambda r, h: (jnp.maximum(h - 1, 0), r, 0)),
                pl.BlockSpec(memory_space=pltpu.MemorySpace.VMEM),    # thresholds
                pl.BlockSpec(memory_space=pltpu.MemorySpace.SMEM),    # scalars
            ],
            out_specs=pl.BlockSpec((1, 8, 128), lambda r, h: (r, 0, 0)),
            scratch_shapes=[pltpu.SMEM((1,), jnp.float32)],
        ),
        compiler_params=pltpu.CompilerParams(
            dimension_semantics=("parallel", "arbitrary"),
            vmem_limit_bytes=48 * 1024 * 1024),
    )(labels2d, outputs, outputs_classifier, thresholds, scal)

    # Lane-dense per-row-tile partial sums; the whole (8,128) slab of each
    # row tile is a broadcast of its value, so read lane/sublane 0.
    return jnp.sum(partials[:, 0, 0])


# ---------------------------- pure-JAX reference -----------------------------
def _reference(outputs, outputs_classifier, labels, thresholds,
               lambda_1, lambda_2, R_threshold):
    def ce(logits, labels):
        logp = jax.nn.log_softmax(logits.astype(jnp.float32), axis=-1)
        return -jnp.mean(logp[jnp.arange(labels.shape[0]), labels])

    loss = ce(outputs, labels)
    for i in range(outputs_classifier.shape[0]):
        loss = loss + ce(outputs_classifier[i], labels)

    t = jax.nn.sigmoid(thresholds.astype(jnp.float32))            # [4, 12]
    attn = jnp.maximum(t[0], 1.0 / 12.0)
    o_m = jnp.maximum(t[1], 1.0 / 768.0)
    fc1 = jnp.maximum(t[2], 1.0 / 3072.0)
    fc2 = jnp.maximum(t[3], 1.0 / 768.0)
    remain = attn * 3.0 + attn * o_m + fc1 * 4.0 + fc1 * fc2 * 4.0
    param_remain = jnp.sum(remain)
    diff = param_remain / 144.0 - R_threshold
    lag = jnp.where(diff <= 0, 0.0, lambda_1 * diff + lambda_2 * diff * diff)
    if R_threshold >= 1:
        lag = 0.0
    return loss + lag


if __name__ == "__main__":
    key = jax.random.PRNGKey(0)
    k1, k2, k3, k4 = jax.random.split(key, 4)

    B, C, K = 8, 32, 2            # batch, num classes, aux classifier heads
    outputs = jax.random.normal(k1, (B, C), dtype=jnp.float32)
    outputs_classifier = jax.random.normal(k2, (K, B, C), dtype=jnp.float32)
    labels = jax.random.randint(k3, (B,), 0, C, dtype=jnp.int32)

    # Synthetic "threshold" parameters of the pruned model:
    # 4 block types (attn, o_matrix, fc1, fc2) x 12 transformer layers.
    thresholds = jax.random.normal(k4, (4, 12), dtype=jnp.float32)

    lambda_1, lambda_2 = 0.1, 0.05

    # Case 1: pruning regularizer active.
    loss = loss_with_classifier_and_pruning(
        outputs, outputs_classifier, labels, thresholds,
        lambda_1, lambda_2, R_threshold=0.5)
    loss = jax.block_until_ready(loss)
    ref = _reference(outputs, outputs_classifier, labels, thresholds,
                     lambda_1, lambda_2, 0.5)
    assert jnp.allclose(loss, ref, rtol=1e-5, atol=1e-5), (loss, ref)

    # Case 2: R_threshold >= 1 disables the pruning term.
    loss2 = loss_with_classifier_and_pruning(
        outputs, outputs_classifier, labels, thresholds,
        lambda_1, lambda_2, R_threshold=1.0)
    loss2 = jax.block_until_ready(loss2)
    ref2 = _reference(outputs, outputs_classifier, labels, thresholds,
                      lambda_1, lambda_2, 1.0)
    assert jnp.allclose(loss2, ref2, rtol=1e-5, atol=1e-5), (loss2, ref2)

    # Case 3: awkward batch — multi-row-tile grid with a masked trailing tile.
    B3 = 20
    out3 = jax.random.normal(k1, (B3, C), dtype=jnp.float32)
    cls3 = jax.random.normal(k2, (K, B3, C), dtype=jnp.float32)
    lab3 = jax.random.randint(k3, (B3,), 0, C, dtype=jnp.int32)
    loss3 = loss_with_classifier_and_pruning(
        out3, cls3, lab3, thresholds, lambda_1, lambda_2,
        R_threshold=0.5, max_tile_rows=8)
    loss3 = jax.block_until_ready(loss3)
    ref3 = _reference(out3, cls3, lab3, thresholds, lambda_1, lambda_2, 0.5)
    assert jnp.allclose(loss3, ref3, rtol=1e-5, atol=1e-5), (loss3, ref3)

    # Case 4: bf16 logits exercise the native-dtype max/select hot path.
    loss4 = loss_with_classifier_and_pruning(
        outputs.astype(jnp.bfloat16), outputs_classifier.astype(jnp.bfloat16),
        labels, thresholds, lambda_1, lambda_2, R_threshold=0.5)
    loss4 = jax.block_until_ready(loss4)
    ref4 = _reference(outputs.astype(jnp.bfloat16),
                      outputs_classifier.astype(jnp.bfloat16),
                      labels, thresholds, lambda_1, lambda_2, 0.5)
    assert jnp.allclose(loss4, ref4, rtol=2e-2, atol=5e-2), (loss4, ref4)

    print("KERNEL_OK")
</pallas_src>

<mosaic_0001>
module attributes {stable_mosaic.version = 11 : i64} {
  func.func @kernel(%arg0: i32, %arg1: i32, %arg2: memref<8x1xi32, #tpu.memory_space<vmem>>, %arg3: memref<8x32xf32, #tpu.memory_space<vmem>>, %arg4: memref<1x8x32xf32, #tpu.memory_space<vmem>>, %arg5: memref<4x12xf32, #tpu.memory_space<vmem>>, %arg6: memref<3xf32, #tpu.memory_space<smem>>, %arg7: memref<1x8x128xf32, #tpu.memory_space<vmem>>, %arg8: memref<1xf32, #tpu.memory_space<smem>>) attributes {dimension_semantics = [#tpu.dimension_semantics<parallel>, #tpu.dimension_semantics<arbitrary>], iteration_bounds = array<i64: 1, 3>, scalar_prefetch = 0 : i64, scratch_operands = 1 : i64, tpu.core_type = #tpu.core_type<tc>, window_params = [{transform_indices = @transform_0, window_bounds = array<i64: 8, 1>}, {transform_indices = @transform_1, window_bounds = array<i64: 8, 32>}, {transform_indices = @transform_2, window_bounds = array<i64: 1, 8, 32>}, {pipeline_mode = #tpu.pipeline_mode<synchronous>, transform_indices = @transform_3, window_bounds = array<i64: 4, 12>}, {transform_indices = @transform_4, window_bounds = array<i64: 3>}, {transform_indices = @transform_5, window_bounds = array<i64: 1, 8, 128>}]} {
    %c0_i32 = arith.constant 0 : i32
    %0 = arith.cmpi eq, %arg1, %c0_i32 : i32
    %1 = arith.extui %0 : i1 to i32
    %c0_i32_0 = arith.constant 0 : i32
    %2 = arith.cmpi ne, %1, %c0_i32_0 : i32
    scf.if %2 {
      %c0 = arith.constant 0 : index
      %c0_7 = arith.constant 0 : index
      %14 = vector.load %arg3[%c0, %c0_7] : memref<8x32xf32, #tpu.memory_space<vmem>>, vector<8x32xf32>
      %c0_8 = arith.constant 0 : index
      %c0_9 = arith.constant 0 : index
      %15 = vector.load %arg2[%c0_8, %c0_9] : memref<8x1xi32, #tpu.memory_space<vmem>>, vector<8x1xi32>
      %cst = arith.constant dense<0xFF800000> : vector<8xf32>
      %16 = vector.multi_reduction <maximumf>, %14, %cst [1] : vector<8x32xf32> to vector<8xf32>
      %17 = vector.shape_cast %16 : vector<8xf32> to vector<8x1xf32>
      %18 = tpu.iota {dimensions = array<i32: 1>} : vector<8x32xi32>
      %19 = vector.broadcast %15 : vector<8x1xi32> to vector<8x32xi32>
      %20 = arith.cmpi eq, %18, %19 : vector<8x32xi32>
      %cst_10 = arith.constant 0.000000e+00 : f32
      %21 = vector.broadcast %cst_10 : f32 to vector<8x32xf32>
      %22 = arith.select %20, %14, %21 : vector<8x32xi1>, vector<8x32xf32>
      %cst_11 = arith.constant dense<0.000000e+00> : vector<8xf32>
      %23 = vector.multi_reduction <add>, %22, %cst_11 [1] : vector<8x32xf32> to vector<8xf32>
      %24 = vector.shape_cast %23 : vector<8xf32> to vector<8x1xf32>
      %25 = vector.broadcast %17 : vector<8x1xf32> to vector<8x32xf32>
      %26 = arith.subf %14, %25 : vector<8x32xf32>
      %27 = math.exp %26 : vector<8x32xf32>
      %cst_12 = arith.constant dense<0.000000e+00> : vector<8xf32>
      %28 = vector.multi_reduction <add>, %27, %cst_12 [1] : vector<8x32xf32> to vector<8xf32>
      %29 = vector.shape_cast %28 : vector<8xf32> to vector<8x1xf32>
      %30 = math.log %29 : vector<8x1xf32>
      %31 = arith.addf %17, %30 : vector<8x1xf32>
      %32 = arith.subf %31, %24 : vector<8x1xf32>
      %33 = vector.shape_cast %32 : vector<8x1xf32> to vector<1x8x1xf32>
      %cst_13 = arith.constant dense<0.000000e+00> : vector<1xf32>
      %34 = vector.multi_reduction <add>, %33, %cst_13 [1, 2] : vector<1x8x1xf32> to vector<1xf32>
      %35 = vector.shape_cast %34 : vector<1xf32> to vector<1x1x1xf32>
      %36 = vector.extract %35[0, 0, 0] : f32 from vector<1x1x1xf32>
      %c0_14 = arith.constant 0 : index
      %37 = memref.load %arg8[%c0_14] : memref<1xf32, #tpu.memory_space<smem>>
      memref.store %36, %arg8[%c0_14] : memref<1xf32, #tpu.memory_space<smem>>
    } else {
    }
    %c0_i32_1 = arith.constant 0 : i32
    %3 = arith.cmpi ne, %arg1, %c0_i32_1 : i32
    %4 = arith.extui %3 : i1 to i32
    %c0_i32_2 = arith.constant 0 : i32
    %5 = arith.cmpi ne, %4, %c0_i32_2 : i32
    scf.if %5 {
      %c0 = arith.constant 0 : index
      %14 = memref.load %arg8[%c0] : memref<1xf32, #tpu.memory_space<smem>>
      %c0_7 = arith.constant 0 : index
      %c0_8 = arith.constant 0 : index
      %c0_9 = arith.constant 0 : index
      %15 = vector.load %arg4[%c0_7, %c0_8, %c0_9] : memref<1x8x32xf32, #tpu.memory_space<vmem>>, vector<1x8x32xf32>
      %16 = vector.shape_cast %15 : vector<1x8x32xf32> to vector<8x32xf32>
      %c0_10 = arith.constant 0 : index
      %c0_11 = arith.constant 0 : index
      %17 = vector.load %arg2[%c0_10, %c0_11] : memref<8x1xi32, #tpu.memory_space<vmem>>, vector<8x1xi32>
      %cst = arith.constant dense<0xFF800000> : vector<8xf32>
      %18 = vector.multi_reduction <maximumf>, %16, %cst [1] : vector<8x32xf32> to vector<8xf32>
      %19 = vector.shape_cast %18 : vector<8xf32> to vector<8x1xf32>
      %20 = tpu.iota {dimensions = array<i32: 1>} : vector<8x32xi32>
      %21 = vector.broadcast %17 : vector<8x1xi32> to vector<8x32xi32>
      %22 = arith.cmpi eq, %20, %21 : vector<8x32xi32>
      %cst_12 = arith.constant 0.000000e+00 : f32
      %23 = vector.broadcast %cst_12 : f32 to vector<8x32xf32>
      %24 = arith.select %22, %16, %23 : vector<8x32xi1>, vector<8x32xf32>
      %cst_13 = arith.constant dense<0.000000e+00> : vector<8xf32>
      %25 = vector.multi_reduction <add>, %24, %cst_13 [1] : vector<8x32xf32> to vector<8xf32>
      %26 = vector.shape_cast %25 : vector<8xf32> to vector<8x1xf32>
      %27 = vector.broadcast %19 : vector<8x1xf32> to vector<8x32xf32>
      %28 = arith.subf %16, %27 : vector<8x32xf32>
      %29 = math.exp %28 : vector<8x32xf32>
      %cst_14 = arith.constant dense<0.000000e+00> : vector<8xf32>
      %30 = vector.multi_reduction <add>, %29, %cst_14 [1] : vector<8x32xf32> to vector<8xf32>
      %31 = vector.shape_cast %30 : vector<8xf32> to vector<8x1xf32>
      %32 = math.log %31 : vector<8x1xf32>
      %33 = arith.addf %19, %32 : vector<8x1xf32>
      %34 = arith.subf %33, %26 : vector<8x1xf32>
      %35 = vector.shape_cast %34 : vector<8x1xf32> to vector<1x8x1xf32>
      %cst_15 = arith.constant dense<0.000000e+00> : vector<1xf32>
      %36 = vector.multi_reduction <add>, %35, %cst_15 [1, 2] : vector<1x8x1xf32> to vector<1xf32>
      %37 = vector.shape_cast %36 : vector<1xf32> to vector<1x1x1xf32>
      %38 = vector.extract %37[0, 0, 0] : f32 from vector<1x1x1xf32>
      %39 = arith.addf %14, %38 : f32
      %c0_16 = arith.constant 0 : index
      %40 = memref.load %arg8[%c0_16] : memref<1xf32, #tpu.memory_space<smem>>
      memref.store %39, %arg8[%c0_16] : memref<1xf32, #tpu.memory_space<smem>>
    } else {
    }
    %c2_i32 = arith.constant 2 : i32
    %6 = arith.cmpi eq, %arg1, %c2_i32 : i32
    %7 = arith.extui %6 : i1 to i32
    %c0_i32_3 = arith.constant 0 : i32
    %8 = arith.cmpi ne, %7, %c0_i32_3 : i32
    scf.if %8 {
      %c0 = arith.constant 0 : index
      %14 = memref.load %arg8[%c0] : memref<1xf32, #tpu.memory_space<smem>>
      %cst = arith.constant 1.250000e-01 : f32
      %15 = arith.mulf %14, %cst : f32
      %16 = vector.broadcast %15 : f32 to vector<1x8x128xf32>
      %c0_7 = arith.constant 0 : index
      %c0_8 = arith.constant 0 : index
      %c0_9 = arith.constant 0 : index
      %17 = vector.load %arg7[%c0_7, %c0_8, %c0_9] : memref<1x8x128xf32, #tpu.memory_space<vmem>>, vector<1x8x128xf32>
      tpu.vector_store %arg7[%c0_7, %c0_8, %c0_9], %16 {strides = array<i32>} : memref<1x8x128xf32, #tpu.memory_space<vmem>>, vector<1x8x128xf32>,
    } else {
    }
    %c2_i32_4 = arith.constant 2 : i32
    %9 = arith.cmpi eq, %arg1, %c2_i32_4 : i32
    %c0_i32_5 = arith.constant 0 : i32
    %10 = arith.cmpi eq, %arg0, %c0_i32_5 : i32
    %11 = arith.andi %9, %10 : i1
    %12 = arith.extui %11 : i1 to i32
    %c0_i32_6 = arith.constant 0 : i32
    %13 = arith.cmpi ne, %12, %c0_i32_6 : i32
    scf.if %13 {
      %c0 = arith.constant 0 : index
      %c0_7 = arith.constant 0 : index
      %14 = vector.load %arg5[%c0, %c0_7] : memref<4x12xf32, #tpu.memory_space<vmem>>, vector<4x12xf32>
      %15 = arith.negf %14 : vector<4x12xf32>
      %16 = math.exp %15 : vector<4x12xf32>
      %cst = arith.constant 1.000000e+00 : f32
      %17 = vector.broadcast %cst : f32 to vector<4x12xf32>
      %18 = arith.addf %17, %16 : vector<4x12xf32>
      %19 = arith.divf %17, %18 : vector<4x12xf32>
      %20 = vector.extract_strided_slice %19 {offsets = [0, 0], sizes = [1, 12], strides = [1, 1]} : vector<4x12xf32> to vector<1x12xf32>
      %cst_8 = arith.constant 0.0833333358 : f32
      %21 = vector.broadcast %cst_8 : f32 to vector<1x12xf32>
      %22 = arith.maximumf %20, %21 : vector<1x12xf32>
      %23 = vector.extract_strided_slice %19 {offsets = [1, 0], sizes = [1, 12], strides = [1, 1]} : vector<4x12xf32> to vector<1x12xf32>
      %cst_9 = arith.constant 0.00130208337 : f32
      %24 = vector.broadcast %cst_9 : f32 to vector<1x12xf32>
      %25 = arith.maximumf %23, %24 : vector<1x12xf32>
      %26 = vector.extract_strided_slice %19 {offsets = [2, 0], sizes = [1, 12], strides = [1, 1]} : vector<4x12xf32> to vector<1x12xf32>
      %cst_10 = arith.constant 3.25520843E-4 : f32
      %27 = vector.broadcast %cst_10 : f32 to vector<1x12xf32>
      %28 = arith.maximumf %26, %27 : vector<1x12xf32>
      %29 = vector.extract_strided_slice %19 {offsets = [3, 0], sizes = [1, 12], strides = [1, 1]} : vector<4x12xf32> to vector<1x12xf32>
      %cst_11 = arith.constant 0.00130208337 : f32
      %30 = vector.broadcast %cst_11 : f32 to vector<1x12xf32>
      %31 = arith.maximumf %29, %30 : vector<1x12xf32>
      %cst_12 = arith.constant 3.000000e+00 : f32
      %32 = vector.broadcast %cst_12 : f32 to vector<1x12xf32>
      %33 = arith.mulf %22, %32 : vector<1x12xf32>
      %34 = arith.mulf %22, %25 : vector<1x12xf32>
      %35 = arith.addf %33, %34 : vector<1x12xf32>
      %cst_13 = arith.constant 4.000000e+00 : f32
      %36 = vector.broadcast %cst_13 : f32 to vector<1x12xf32>
      %37 = arith.mulf %28, %36 : vector<1x12xf32>
      %38 = arith.addf %35, %37 : vector<1x12xf32>
      %39 = arith.mulf %28, %31 : vector<1x12xf32>
      %cst_14 = arith.constant 4.000000e+00 : f32
      %40 = vector.broadcast %cst_14 : f32 to vector<1x12xf32>
      %41 = arith.mulf %39, %40 : vector<1x12xf32>
      %42 = arith.addf %38, %41 : vector<1x12xf32>
      %43 = vector.shape_cast %42 : vector<1x12xf32> to vector<1x1x12xf32>
      %cst_15 = arith.constant dense<0.000000e+00> : vector<1xf32>
      %44 = vector.multi_reduction <add>, %43, %cst_15 [1, 2] : vector<1x1x12xf32> to vector<1xf32>
      %45 = vector.shape_cast %44 : vector<1xf32> to vector<1x1x1xf32>
      %46 = vector.extract %45[0, 0, 0] : f32 from vector<1x1x1xf32>
      %cst_16 = arith.constant 1.440000e+02 : f32
      %47 = arith.divf %46, %cst_16 : f32
      %c0_17 = arith.constant 0 : index
      %48 = memref.load %arg6[%c0_17] : memref<3xf32, #tpu.memory_space<smem>>
      %c1 = arith.constant 1 : index
      %49 = memref.load %arg6[%c1] : memref<3xf32, #tpu.memory_space<smem>>
      %c2 = arith.constant 2 : index
      %50 = memref.load %arg6[%c2] : memref<3xf32, #tpu.memory_space<smem>>
      %51 = arith.subf %47, %50 : f32
      %cst_18 = arith.constant 0.000000e+00 : f32
      %52 = arith.cmpf ole, %51, %cst_18 : f32
      %53 = arith.mulf %48, %51 : f32
      %54 = arith.mulf %49, %51 : f32
      %55 = arith.mulf %54, %51 : f32
      %56 = arith.addf %53, %55 : f32
      %cst_19 = arith.constant 0.000000e+00 : f32
      %57 = arith.select %52, %cst_19, %56 : f32
      %c0_20 = arith.constant 0 : index
      %c0_21 = arith.constant 0 : index
      %c0_22 = arith.constant 0 : index
      %58 = vector.load %arg7[%c0_20, %c0_21, %c0_22] : memref<1x8x128xf32, #tpu.memory_space<vmem>>, vector<1x8x128xf32>
      %59 = vector.broadcast %57 : f32 to vector<1x8x128xf32>
      %60 = arith.addf %58, %59 : vector<1x8x128xf32>
      %c0_23 = arith.constant 0 : index
      %c0_24 = arith.constant 0 : index
      %c0_25 = arith.constant 0 : index
      %61 = vector.load %arg7[%c0_23, %c0_24, %c0_25] : memref<1x8x128xf32, #tpu.memory_space<vmem>>, vector<1x8x128xf32>
      tpu.vector_store %arg7[%c0_23, %c0_24, %c0_25], %60 {strides = array<i32>} : memref<1x8x128xf32, #tpu.memory_space<vmem>>, vector<1x8x128xf32>,
    } else {
    }
    return
  }
  func.func @transform_0(%arg0: i32, %arg1: i32) -> (i32, i32) {
    %c0_i32 = arith.constant 0 : i32
    %c0_i32_0 = arith.constant 0 : i32
    return %arg0, %c0_i32 : i32, i32
  }
  func.func @transform_1(%arg0: i32, %arg1: i32) -> (i32, i32) {
    %c0_i32 = arith.constant 0 : i32
    %c0_i32_0 = arith.constant 0 : i32
    return %arg0, %c0_i32 : i32, i32
  }
  func.func @transform_2(%arg0: i32, %arg1: i32) -> (i32, i32, i32) {
    %c1_i32 = arith.constant 1 : i32
    %0 = arith.subi %arg1, %c1_i32 : i32
    %c0_i32 = arith.constant 0 : i32
    %1 = arith.maxsi %0, %c0_i32 : i32
    %c0_i32_0 = arith.constant 0 : i32
    %c0_i32_1 = arith.constant 0 : i32
    return %1, %arg0, %c0_i32_0 : i32, i32, i32
  }
  func.func @transform_3(%arg0: i32, %arg1: i32) -> (i32, i32) {
    %c0_i32 = arith.constant 0 : i32
    %c0_i32_0 = arith.constant 0 : i32
    %c0_i32_1 = arith.constant 0 : i32
    return %c0_i32, %c0_i32_0 : i32, i32
  }
  func.func @transform_4(%arg0: i32, %arg1: i32) -> i32 {
    %c0_i32 = arith.constant 0 : i32
    %c0_i32_0 = arith.constant 0 : i32
    return %c0_i32 : i32
  }
  func.func @transform_5(%arg0: i32, %arg1: i32) -> (i32, i32, i32) {
    %c0_i32 = arith.constant 0 : i32
    %c0_i32_0 = arith.constant 0 : i32
    %c0_i32_1 = arith.constant 0 : i32
    return %arg0, %c0_i32, %c0_i32_0 : i32, i32, i32
  }
}

</mosaic_0001>

<bundles_post_ra>
// kernel: tpu_custom_call.1
= control target key start
LH: loop header
LB: loop body
LE: loop exit
PB: predicated region body
PF: predicated region fallthrough
CT: control target
= control target key end

     0   :  { %10 = vsyncpa [#allocation4], 0  ;;  %s962_s0 = inlined_call_operand.vmem [shape: s32[8,1], index: 0, kind: input, shape index: {}]   ;;  %s963_s1 = inlined_call_operand.hbm [shape: f32[8,32], index: 1, kind: input, shape index: {}]   ;;  %s964_s2 = inlined_call_operand.vmem [shape: f32[2,8,32], index: 2, kind: input, shape index: {}]   ;;  %s965_s3 = inlined_call_operand.vmem [shape: f32[4,12], index: 3, kind: input, shape index: {}]   ;;  %s966_s4 = inlined_call_operand.vmem [shape: f32[3], index: 4, kind: input, shape index: {}]   ;;  %s967_s5 = inlined_call_operand.hbm [shape: f32[1,8,128], index: 5, kind: output, shape index: {}]  }
   0x1   :  { %11 = vsyncpa [#allocation6], 0 }
   0x2   :  { %12 = vsyncpa [#allocation5], 0  ;;  %s813_s18 = smov 0   ;;  %s815_s19 = smov 0  }
   0x3   :  { %s817_s20 = smov 0  }
   0x4 LB: > { %s567_s21 = sadd.s32 4294967295, %s776_s20   ;;  %s27_s22 = sadd.s32 1, %s772_s19  ;;  %s776_s20 = sphi %s817_s20, %s18_s20   ;;  %s772_s19 = sphi %s815_s19, %s978_s19   ;;  %s768_s18 = sphi %s813_s18, %s977_s18  }
   0x5   : > { %p28_p0 = scmp.ge.s32.totalorder %s27_s22, 3  ;;  %p570_p1 = scmp.ge.s32.totalorder %s776_s20, 1 }
   0x6   : > { %p189_p2 = scmp.lt.s32.totalorder %s776_s20, 4  ;;  %p840_p4 = scmp.eq.s32.totalorder %s567_s21, 0 }
   0x7   : > { %s980_s22 = smov (%p28_p0, %s27_s22), 0  ;;  %s225_s27 = sshll.u32 %s966_s4, 4  ;;  %s855_s27 = int_to_ptr.vmem [resolvable:$true] %s225_s27 }
   0x8   : > { %p834_p3 = pnand %p570_p1, %p189_p2  ;;  %s778_s28 = smov [#allocation3]  }
   0x9   : > { %s972_s24 = scalar_select %p840_p4, 1, 0 }
   0xa   : > { %s971_s23 = scalar_select %p834_p3, 1, 0 }
   0xb   : > { %p617_p5 = pneg %p834_p3  ;;  %s211_s29 = sshll.u32 %s778_s28, 4  ;;  %s212_s29 = int_to_ptr.vmem [resolvable:$true] %s211_s29 }
   0xc   : > { %s673_s8 = scalar_lea.hbm %s963_s1, 128 }
   0xd   : > { %p851_p6 = pnand %p840_p4, %p617_p5  ;;  %p674_p7 = scmp.ne.s32.totalorder %s963_s1, %s673_s8 }
   0xe   : > { %p680_p11 = scmp.lt.u32.totalorder %s673_s8, %s963_s1 }
   0xf   : > { %p675_p8 = pneg %p851_p6 }
  0x11   : > { %p676_p9 = pnand %p675_p8, %p674_p7 }
  0x13   : > { %p677_p10 = pneg %p676_p9 }
  0x15   : > { %p682_p12 = pnand %p680_p11, %p677_p10 }
  0x17   : > { %685 = shalt.err (!%p682_p12)
}
  0x18   : > { %s686_s13 = scalar_lea.vmem %s212_s29, 128  ;;  %p694_p2 = scmp.lt.s32.totalorder %s212_s29, %s212_s29 }
  0x19   : > { %p687_p13 = scmp.ne.s32.totalorder %s212_s29, %s686_s13  ;;  %p695_p5 = scmp.lt.s32.totalorder %s686_s13, %s686_s13 }
  0x1b   : > { %p689_p0 = pnand %p687_p13, %p675_p8  ;;  %p696_p4 = por %p695_p5, %p694_p2 }
  0x1d   : > { %p690_p1 = pneg %p689_p0 }
  0x1f   : > { %p697_p3 = pnand %p696_p4, %p690_p1 }
  0x21   : > { %700 = shalt.err (!%p697_p3)
}
  0x22   : > { %620 = dma.hbm_to_vmem [thread:$0]  (!%p851_p6), %s963_s1, 128, %s212_s29, [#allocation4]  }
  0x23   : > { %s701_s16 = scalar_lea.vmem %s855_s27, 16  ;;  %p709_p11 = scmp.lt.s32.totalorder %s855_s27, %s855_s27 }
  0x24   : > { %p702_p7 = scmp.ne.s32.totalorder %s855_s27, %s701_s16  ;;  %p710_p4 = scmp.lt.s32.totalorder %s701_s16, %s701_s16 }
  0x26   : > { %p704_p9 = pnand %p702_p7, %p675_p8  ;;  %p711_p3 = por %p710_p4, %p709_p11 }
  0x28   : > { %p705_p10 = pneg %p704_p9 }
  0x2a   : > { %p712_p12 = pnand %p711_p3, %p705_p10 }
  0x2c   : > { %715 = shalt.err (!%p712_p12)
}
  0x2d   : > { %s779_s17 = smov [#allocation7]   ;;  %p974_p13 = scmp.ne.s32.totalorder %s971_s23, 0 }
  0x2e   : > { %623 = dma.vmem_to_smem (!%p851_p6), %s855_s27, 16, %s779_s17, [#allocation6]  }
  0x2f   : > { %254 = sbr.rel (%p974_p13) target bundleno = 1408 (0x580), region = 40  ;;  %p975_p0 = scmp.ne.s32.totalorder (!%p974_p13), %s972_s24, 0 }
  0x36   : > { %755 = dma.done.wait (%p975_p0), [#allocation4], 128  }
  0x37   : > { %757 = vsyncadd (%p975_p0), [#allocation4], 4294967168 }
  0x38   : > { %759 = dma.done.wait (%p975_p0), [#allocation6], 16  }
  0x39   : > { %761 = vsyncadd (%p975_p0), [#allocation6], 4294967280 }
  0x3a   : > { %264 = sfence }
  0x3b   : > { %s578_s25 = sadd.s32 4294967295, %s768_s18  ;;  %p585_p1 = scmp.ne.s32.totalorder %s768_s18, 0 }
  0x3c   : > { %p296_p8 = scmp.gt.s32.totalorder %s578_s25, 0  ;;  %p579_p6 = scmp.lt.s32.totalorder %s578_s25, 1  ;;  %v312_v0 = vld [vmem:[#allocation3] sm:$0xff] (!%p585_p1)  ;;  %vm314_vm0 = vcmask (!%p585_p1), 261120   ;;  %v780_v2 = vmov (!%p585_p1), 0   ;;  %v313_v3 = vld [vmem:[%s962_s0] sm:$0xff] (!%p585_p1)  ;;  %v318_v7 = vlaneseq (!%p585_p1) }
  0x3d   : > { %311 = sbr.rel (%p585_p1) target bundleno = 585 (0x249), region = 52  ;;  %v315_v1 = vsel (!%p585_p1), %vm314_vm0, %v312_v0, -inf  ;;  %659 = vset.pattern.permute.xlu0 (!%p585_p1), %v780_v2  ;;  %vm338_vm2 = vcmask (!%p585_p1), 7168  }
  0x3e   : > { %s982_s25 = smov (!%p296_p8, %s578_s25), 0  ;;  %316 = vmax.xlane.f32.xlu0 (!%p585_p1), %v315_v1  ;;  %v319_v8 = vand.u32 (!%p585_p1), 127, %v318_v7 }
  0x3f   : > { %s984_s25 = smov (!%p579_p6, %s982_s25), 1 }
  0x40   : > { %s584_s23 = sshll.u32 %s984_s25, 3 }
  0x41   : > { %s903_s28 = scalar_lea.vmem %s964_s2, %s584_s23 }
  0x54   : > { %321 = vperm.xlu0 %659, %v313_v3  }
  0xcb   : > { %v317_v4 = vpop.xlane.xlu0 %316 }
  0xcc   : > { %v328_v5 = vsub.f32 %v312_v0, %v317_v4 }
  0xce   : > { %v329_v6 = vmul.f32 1.442695, %v328_v5 }
  0xd0   : > { %660 = vpow2.f32 %v329_v6 }
  0xd3   : > { %v322_v9 = vpop.permute.xlu0 %321 }
  0xd4   : > { %vm323_vm1 = vcmp.eq.s32.totalorder %v319_v8, %v322_v9 }
  0xd5   : > { %v324_v11 = vsel %vm323_vm1, %v312_v0, 0.0 }
  0xd6   : > { %v325_v13 = vsel %vm314_vm0, %v324_v11, 0.0 }
  0xda   : > { %v661_v10 = vpop.eup %660 }
  0xdb   : > { %v331_v12 = vsel %vm314_vm0, %v661_v10, 0.0 }
  0xdc   : > { %332 = vadd.xlane.f32.xlu1 %v331_v12 }
  0xe0   : > { %326 = vadd.xlane.f32.xlu1 %v325_v13 }
 0x169   : > { %v333_v14 = vpop.xlane.xlu1 %332 }
 0x16a   : > { %662 = vlog2.f32 %v333_v14 }
 0x16d   : > { %v327_v17 = vpop.xlane.xlu1 %326 }
 0x174   : > { %v663_v15 = vpop.eup %662 }
 0x175   : > { %v335_v16 = vmul.f32 0.6931472, %v663_v15 }
 0x177   : > { %v336_v18 = vadd.f32 %v335_v16, %v317_v4 }
 0x179   : > { %v337_v19 = vsub.f32 %v336_v18, %v327_v17 }
 0x17b   : > { %v339_v20 = vsel %vm338_vm2, %v337_v19, 0.0 }
 0x17c   : > { %340 = vadd.xlane.f32.xlu1 %v339_v20 }
 0x209   : > { %v341_v21 = vpop.xlane.xlu1 %340 }
 0x20a   : > { %v342_v22 = vrot.slane %v341_v21, 4 }
 0x20c   : > { %v343_v23 = vadd.f32 %v342_v22, %v341_v21 }
 0x20e   : > { %v344_v24 = vrot.slane %v343_v23, 2 }
 0x210   : > { %v345_v25 = vadd.f32 %v344_v24, %v343_v23 }
 0x212   : > { %v346_v26 = vrot.slane %v345_v25, 1 }
 0x214   : > { %v347_v27 = vadd.f32 %v346_v26, %v345_v25 }
 0x216   : > { %599 = vpush %v347_v27 }
 0x247   : > { %s600_s30 = spop %599 }
 0x248   : > { %350 = sst [smem:[#allocation2]] %s600_s30 }
 0x249 PF: > { %p586_p2 = scmp.eq.s32.totalorder %s768_s18, 0 }
 0x24a   : > { %v356_v28 = vld [vmem:[%s903_s28] sm:$0xff] (!%p586_p2)  ;;  %vm358_vm3 = vcmask (!%p586_p2), 261120   ;;  %v781_v30 = vmov (!%p586_p2), 0   ;;  %v362_v35 = vlaneseq (!%p586_p2)  ;;  %vm382_vm5 = vcmask (!%p586_p2), 7168   ;;  %s355_s8 = sld [smem:[#allocation2]] (!%p586_p2) }
 0x24b   : > { %354 = sbr.rel (%p586_p2) target bundleno = 1113 (0x459), region = 56  ;;  %v359_v29 = vsel (!%p586_p2), %vm358_vm3, %v356_v28, -inf  ;;  %664 = vset.pattern.permute.xlu0 (!%p586_p2), %v781_v30  ;;  %v357_v31 = vld [vmem:[%s962_s0] sm:$0xff] (!%p586_p2) }
 0x24c   : > { %360 = vmax.xlane.f32.xlu0 (!%p586_p2), %v359_v29  ;;  %v363_v36 = vand.u32 (!%p586_p2), 127, %v362_v35 }
 0x262   : > { %365 = vperm.xlu0 %664, %v357_v31  }
 0x2d9   : > { %v361_v32 = vpop.xlane.xlu0 %360 }
 0x2da   : > { %v372_v33 = vsub.f32 %v356_v28, %v361_v32 }
 0x2dc   : > { %v373_v34 = vmul.f32 1.442695, %v372_v33 }
 0x2de   : > { %665 = vpow2.f32 %v373_v34 }
 0x2e1   : > { %v366_v37 = vpop.permute.xlu0 %365 }
 0x2e2   : > { %vm367_vm4 = vcmp.eq.s32.totalorder %v363_v36, %v366_v37 }
 0x2e3   : > { %v368_v39 = vsel %vm367_vm4, %v356_v28, 0.0 }
 0x2e4   : > { %v369_v41 = vsel %vm358_vm3, %v368_v39, 0.0 }
 0x2e8   : > { %v666_v38 = vpop.eup %665 }
 0x2e9   : > { %v375_v40 = vsel %vm358_vm3, %v666_v38, 0.0 }
 0x2ea   : > { %376 = vadd.xlane.f32.xlu1 %v375_v40 }
 0x2ee   : > { %370 = vadd.xlane.f32.xlu1 %v369_v41 }
 0x377   : > { %v377_v42 = vpop.xlane.xlu1 %376 }
 0x378   : > { %667 = vlog2.f32 %v377_v42 }
 0x37b   : > { %v371_v45 = vpop.xlane.xlu1 %370 }
 0x382   : > { %v668_v43 = vpop.eup %667 }
 0x383   : > { %v379_v44 = vmul.f32 0.6931472, %v668_v43 }
 0x385   : > { %v380_v46 = vadd.f32 %v379_v44, %v361_v32 }
 0x387   : > { %v381_v47 = vsub.f32 %v380_v46, %v371_v45 }
 0x389   : > { %v383_v48 = vsel %vm382_vm5, %v381_v47, 0.0 }
 0x38a   : > { %384 = vadd.xlane.f32.xlu1 %v383_v48 }
 0x417   : > { %v385_v49 = vpop.xlane.xlu1 %384 }
 0x418   : > { %v386_v50 = vrot.slane %v385_v49, 4 }
 0x41a   : > { %v387_v51 = vadd.f32 %v386_v50, %v385_v49 }
 0x41c   : > { %v388_v52 = vrot.slane %v387_v51, 2 }
 0x41e   : > { %v389_v53 = vadd.f32 %v388_v52, %v387_v51 }
 0x420   : > { %v390_v54 = vrot.slane %v389_v53, 1 }
 0x422   : > { %v391_v55 = vadd.f32 %v390_v54, %v389_v53 }
 0x424   : > { %601 = vpush %v391_v55 }
 0x455   : > { %s602_s9 = spop %601 }
 0x456   : > { %s393_s10 = sadd.f32 %s602_s9, %s355_s8 }
 0x458   : > { %395 = sst [smem:[#allocation2]] %s393_s10 }
 0x459 PF: > { %p396_p5 = scmp.eq.s32.totalorder %s768_s18, 2  ;;  %p587_p7 = scmp.ne.s32.totalorder %s768_s18, 2 }
 0x45a   : > { %s400_s11 = sld [smem:[#allocation2]] (!%p587_p7) }
 0x45b   : > { %399 = sbr.rel (%p587_p7) target bundleno = 1124 (0x464), region = 60 }
 0x460   : > { %s401_s12 = smul.f32 (!%p587_p7), 0.125, %s400_s11 }
 0x462   : > { %v402_v56 = vstv %s401_s12 }
 0x463   : > { %403 = vst [vmem:[#allocation8] sm:$0xff] %v402_v56 }
 0x464 PF: > { %408 = sbr.rel (!%p396_p5) target bundleno = 1383 (0x567), region = 64  ;;  %v409_v57 = vld [vmem:[%s965_s3] sm:$0xf] (%p396_p5)  ;;  %vm436_vm6 = vcmask (%p396_p5), 90112   ;;  %s591_s18 = sld [smem:[#allocation7 + $0x2]] (%p396_p5) }
 0x465   : > { %v589_v58 = vmul.f32 (%p396_p5), -1.442695, %v409_v57  ;;  %s590_s15 = sld [smem:[#allocation7 + $0x1]] (%p396_p5)  ;;  %s450_s16 = sld [smem:[#allocation7]] (%p396_p5) }
 0x467   : > { %669 = vpow2.f32 (%p396_p5), %v589_v58 }
 0x46a   : > { %v460_v20 = vld [vmem:[#allocation8] sm:$0xff] (%p396_p5) }
 0x471   : > { %v670_v59 = vpop.eup %669 }
 0x472   : > { %v413_v60 = vadd.f32 1.0, %v670_v59 }
 0x474   : > { %671 = vrcp.f32 %v413_v60 }
 0x47e   : > { %v672_v61 = vpop.eup %671 }
 0x47f   : > { %v416_v62 = vmax.f32 %v672_v61, 0.083333336  ;;  %v417_v63 = vmax.f32 %v672_v61, 0.0013020834  ;;  %v418_v0 = vmax.f32 %v672_v61, 0.00032552084 }
 0x481   : > { %v419_v1 = vmul.f32 3.0, %v416_v62  ;;  %v421_v2 = vrot.slane %v417_v63, 1  ;;  %v425_v3 = vmul.f32 4.0, %v418_v0 }
 0x483   : > { %v423_v4 = vmul.f32 %v421_v2, %v416_v62  ;;  %v427_v5 = vrot.slane %v425_v3, 2  ;;  %v430_v6 = vmul.f32 %v421_v2, %v418_v0 }
 0x485   : > { %v424_v7 = vadd.f32 %v423_v4, %v419_v1  ;;  %v431_v8 = vmul.f32 4.0, %v430_v6 }
 0x487   : > { %v429_v9 = vadd.f32 %v427_v5, %v424_v7  ;;  %v433_v10 = vrot.slane %v431_v8, 2 }
 0x489   : > { %v435_v11 = vadd.f32 %v433_v10, %v429_v9 }
 0x48b   : > { %v437_v12 = vsel %vm436_vm6, %v435_v11, 0.0 }
 0x48c   : > { %438 = vadd.xlane.f32.xlu0 %v437_v12 }
 0x519   : > { %v439_v13 = vpop.xlane.xlu0 %438 }
 0x51a   : > { %v440_v14 = vrot.slane %v439_v13, 4 }
 0x51c   : > { %v441_v15 = vadd.f32 %v440_v14, %v439_v13 }
 0x51e   : > { %v442_v16 = vrot.slane %v441_v15, 2 }
 0x520   : > { %v443_v17 = vadd.f32 %v442_v16, %v441_v15 }
 0x522   : > { %v444_v18 = vrot.slane %v443_v17, 1 }
 0x524   : > { %v445_v19 = vadd.f32 %v444_v18, %v443_v17 }
 0x526   : > { %603 = vpush %v445_v19 }
 0x557   : > { %s604_s17 = spop %603 }
 0x558   : > { %s449_s25 = smul.f32 0.0069444445, %s604_s17 }
 0x55a   : > { %s453_s23 = ssub.f32 %s449_s25, %s591_s18 }
 0x55c   : > { %s456_s26 = smul.f32 %s590_s15, %s453_s23  ;;  %p454_p9 = scmp.le.f32.partialorder %s453_s23, 0.0 }
 0x55d   : > { %s455_s27 = smul.f32 %s453_s23, %s450_s16 }
 0x55e   : > { %s457_s28 = smul.f32 %s456_s26, %s453_s23 }
 0x560   : > { %s458_s24 = sadd.f32 %s457_s28, %s455_s27 }
 0x562   : > { %s986_s24 = smov (%p454_p9, %s458_s24), 0.0 }
 0x563   : > { %v461_v21 = vstv %s986_s24 }
 0x564   : > { %v462_v22 = vadd.f32 %v461_v21, %v460_v20 }
 0x566   : > { %463 = vst [vmem:[#allocation8] sm:$0xff] %v462_v22 }
 0x567 PF: > { %p927_p10 = scmp.eq.s32.totalorder %s567_s21, 2  ;;  %s782_s30 = smov [#allocation8]  }
 0x568   : > { %s473_s6 = sshll.u32 %s782_s30, 4  ;;  %s474_s6 = int_to_ptr.vmem [resolvable:$true] %s473_s6 }
 0x569   : > { %s716_s7 = scalar_lea.vmem %s474_s6, 128  ;;  %p723_p12 = scmp.lt.s32.totalorder %s474_s6, %s474_s6 }
 0x56a   : > { %p717_p11 = scmp.ne.s32.totalorder %s474_s6, %s716_s7  ;;  %p724_p13 = scmp.lt.s32.totalorder %s716_s7, %s716_s7 }
 0x56c   : > { %p718_p4 = pnand %p717_p11, %p927_p10  ;;  %p725_p0 = por %p724_p13, %p723_p12 }
 0x56e   : > { %p719_p3 = pneg %p718_p4 }
 0x570   : > { %p726_p8 = pnand %p725_p0, %p719_p3 }
 0x572   : > { %729 = shalt.err (!%p726_p8)
}
 0x573   : > { %s730_s21 = scalar_lea.hbm %s967_s5, 128 }
 0x574   : > { %p731_p6 = scmp.ne.s32.totalorder %s967_s5, %s730_s21  ;;  %p736_p5 = scmp.lt.u32.totalorder %s730_s21, %s967_s5 }
 0x576   : > { %p732_p1 = pnand %p731_p6, %p927_p10 }
 0x578   : > { %p733_p2 = pneg %p732_p1 }
 0x57a   : > { %p738_p7 = pnand %p736_p5, %p733_p2 }
 0x57c   : > { %741 = shalt.err (!%p738_p7)
}
 0x57d   : > { %614 = dma.vmem_to_hbm [thread:$0]  (%p927_p10), %s474_s6, 128, %s967_s5, [#allocation5]  }
 0x57e   : > { %763 = dma.done.wait (%p927_p10), [#allocation5], 128  }
 0x57f   : > { %765 = vsyncadd (%p927_p10), [#allocation5], 4294967168 }
 0x580 PF: > { %s18_s20 = sadd.s32 1, %s776_s20   ;;  %s977_s18 = smov %s772_s19 }
 0x581   : > { %p15_p9 = scmp.ge.s32.totalorder %s18_s20, 5   ;;  %s978_s19 = smov %s980_s22 }
 0x583   :  { %17 = sbr.rel (!%p15_p9) target bundleno = 4 (0x4), region = 100 }
 0x58a   :  { %486 = vsyncpa [#allocation4], 1 }
 0x58b   :  { %488 = vsyncpa [#allocation4 + $0x1], 1 }
 0x58c   :  { %489 = vsyncpa [#allocation5], 1 }
 0x58d   :  { %491 = vsyncpa [#allocation5 + $0x1], 1 }
 0x58e   :  { %492 = vsyncpa [#allocation6], 1 }
 0x58f   :  { %494 = vsyncpa [#allocation6 + $0x1], 1 }

</bundles_post_ra>
